<compile_context>
chip_gen: v5e
topology: v5e:2x2
jax: 0.10.0
libtpu: 0.0.40
codegen_flags: <defaults>
</compile_context>

<pallas_src>
import functools

import jax
import jax.numpy as jnp
import numpy as np
from jax.experimental import pallas as pl
from jax.experimental.pallas import tpu as pltpu


def _ibr_kernel(x_ref, w_init_ref, w_red_ref, b1_ref, w_span_ref, b2_ref, a_ref,
                o_ref, *, ksize, dilation, pad, w_pad, margin, out_len,
                identity_init):
    # x_ref: (Cin, Lw) one spatially padded image, channels on sublanes,
    #        flattened padded spatial (with an extra `margin` of zeros each side) on lanes.
    x = x_ref[...]

    # ---- involution kernel-generation branch: span(relu(bn1(reduce(x)))) ----
    # bn1 scale is pre-folded into w_red; only the bias add remains.
    h = jnp.dot(w_red_ref[...], x, preferred_element_type=jnp.float32)       # (Cout, Lw)
    h = jnp.maximum(h + b1_ref[...], 0.0)                                    # BN bias + ReLU
    ker = jnp.dot(w_span_ref[...], h, preferred_element_type=jnp.float32)    # (K2, Lw)
    ker_c = ker[:, margin:margin + out_len]                                  # (K2, L_out)

    # ---- initial_mapping 1x1 conv (bn2 scale pre-folded into its weight) ----
    if identity_init:
        mapped = x * w_init_ref[...]                                         # (Cout, Lw) * (Cout, 1)
    else:
        mapped = jnp.dot(w_init_ref[...], x,
                         preferred_element_type=jnp.float32)                 # (Cout, Lw)

    # ---- involution aggregation: K*K shifted reads of `mapped`, no unfold tensor ----
    # out[c, i] = sum_k ker[k, i] * mapped[c, i + shift_k]; zero padding of x makes
    # out-of-image taps contribute exactly 0 (matches nn.Unfold zero padding).
    acc = jnp.zeros((mapped.shape[0], out_len), jnp.float32)
    tap = 0
    for kh in range(ksize):
        for kw in range(ksize):
            s = (kh * dilation - pad) * w_pad + (kw * dilation - pad)
            lo = margin + s                                                   # always >= 0
            acc = acc + ker_c[tap:tap + 1, :] * mapped[:, lo:lo + out_len]
            tap += 1

    # ---- outer BatchNorm2d(eps=1e-3) bias (scale already folded) + per-channel PReLU ----
    out = acc + b2_ref[...]
    o_ref[...] = jnp.where(out > 0, out, a_ref[...] * out)


def ibr_dilated_forward(x_nchw, params, *, ksize, dilation=1):
    """Forward pass of IBRDilated (stride=1, groups=1, reduce_ratio=1), eval-mode BN."""
    B, Cin, H, W = x_nchw.shape
    Cout = params["w_reduce"].shape[1]
    K2 = ksize * ksize
    pad = (ksize - 1) // 2 * dilation
    Hp, Wp = H + 2 * pad, W + 2 * pad
    L = Hp * Wp                                   # flattened padded spatial (lane axis)
    margin = pad * Wp + pad                       # extra flat zero-pad so every tap is an in-bounds slice
    L_out = ((L + 127) // 128) * 128              # lane-dense (multiple of 128) output width
    Lw = L_out + 2 * margin                       # in-kernel working width

    identity_init = params.get("w_init", None) is None
    if identity_init and Cin != Cout:
        raise ValueError("w_init must be provided when Cin != Cout")

    # NCHW -> spatially zero-padded NCHW -> (B, Cin, L) -> widen flat axis by `margin`
    x = x_nchw.astype(jnp.float32)
    xp = jnp.pad(x, ((0, 0), (0, 0), (pad, pad), (pad, pad)))
    x_flat = jnp.pad(xp.reshape(B, Cin, L),
                     ((0, 0), (0, 0), (margin, Lw - margin - L)))

    # Fold eval-mode BatchNorm scales into the 1x1-conv weights (host side, tiny).
    g1, b1, m1, v1 = params["bn1"]                # Involution2d sigma_mapping BN (eps default)
    g2, b2, m2, v2 = params["bn2"]                # outer BatchNorm2d(eps=0.001)
    s1 = g1 / jnp.sqrt(v1 + 1e-5)
    s2 = g2 / jnp.sqrt(v2 + 1e-3)
    w_red_t = (params["w_reduce"] * s1[None, :]).T.astype(jnp.float32)        # (Cout, Cin)
    bias1 = (b1 - m1 * s1).reshape(Cout, 1).astype(jnp.float32)
    bias2 = (b2 - m2 * s2).reshape(Cout, 1).astype(jnp.float32)
    w_span_t = params["w_span"].T.astype(jnp.float32)                         # (K2, Cout)
    prelu_a = params["prelu_a"].reshape(Cout, 1).astype(jnp.float32)
    if identity_init:
        w_init_arg = s2.reshape(Cout, 1).astype(jnp.float32)                  # scale only
        w_init_spec = pl.BlockSpec((Cout, 1), lambda b: (0, 0))
    else:
        w_init_arg = (params["w_init"] * s2[None, :]).T.astype(jnp.float32)   # (Cout, Cin)
        w_init_spec = pl.BlockSpec((Cout, Cin), lambda b: (0, 0))

    kernel = functools.partial(
        _ibr_kernel, ksize=ksize, dilation=dilation, pad=pad, w_pad=Wp,
        margin=margin, out_len=L_out, identity_init=identity_init)

    out_pad = pl.pallas_call(
        kernel,
        out_shape=jax.ShapeDtypeStruct((B, Cout, L_out), jnp.float32),
        grid_spec=pltpu.PrefetchScalarGridSpec(
            num_scalar_prefetch=0,
            grid=(B,),
            in_specs=[
                pl.BlockSpec((None, Cin, Lw), lambda b: (b, 0, 0)),   # one padded image
                w_init_spec,                                          # folded initial_mapping
                pl.BlockSpec((Cout, Cin), lambda b: (0, 0)),          # folded reduce_mapping
                pl.BlockSpec((Cout, 1), lambda b: (0, 0)),            # bn1 bias
                pl.BlockSpec((K2, Cout), lambda b: (0, 0)),           # span_mapping
                pl.BlockSpec((Cout, 1), lambda b: (0, 0)),            # bn2 bias
                pl.BlockSpec((Cout, 1), lambda b: (0, 0)),            # prelu a
            ],
            out_specs=pl.BlockSpec((None, Cout, L_out), lambda b: (b, 0, 0)),
        ),
        compiler_params=pltpu.CompilerParams(
            dimension_semantics=("parallel",)),
    )(x_flat, w_init_arg, w_red_t, bias1, w_span_t, bias2, prelu_a)

    # (B, Cout, L_out) -> crop flat rounding & spatial padding -> NCHW output
    out = out_pad[:, :, :L].reshape(B, Cout, Hp, Wp)
    return out[:, :, pad:pad + H, pad:pad + W]


def _reference(x_nchw, params, *, ksize, dilation):
    """Pure-JAX reference with identical math (for sanity-checking the kernel)."""
    B, Cin, H, W = x_nchw.shape
    Cout = params["w_reduce"].shape[1]
    pad = (ksize - 1) // 2 * dilation
    x = jnp.transpose(x_nchw, (0, 2, 3, 1)).astype(jnp.float32)
    xp = jnp.pad(x, ((0, 0), (pad, pad), (pad, pad), (0, 0)))
    patches = [xp[:, kh * dilation:kh * dilation + H, kw * dilation:kw * dilation + W, :]
               for kh in range(ksize) for kw in range(ksize)]
    x_unf = jnp.stack(patches, axis=3)                                        # (B,H,W,K2,Cin)

    g1, b1, m1, v1 = params["bn1"]
    g2, b2, m2, v2 = params["bn2"]
    h = jnp.einsum("bhwc,cd->bhwd", x, params["w_reduce"])
    h = (h - m1) / jnp.sqrt(v1 + 1e-5) * g1 + b1
    h = jnp.maximum(h, 0.0)
    ker = jnp.einsum("bhwd,dk->bhwk", h, params["w_span"])                    # (B,H,W,K2)

    w_init = params["w_init"] if params["w_init"] is not None else jnp.eye(Cin)
    mapped = jnp.einsum("bhwkc,cd->bhwkd", x_unf, w_init)                     # (B,H,W,K2,Cout)
    out = jnp.sum(ker[..., None] * mapped, axis=3)                            # (B,H,W,Cout)
    out = (out - m2) / jnp.sqrt(v2 + 1e-3) * g2 + b2
    a = params["prelu_a"]
    out = jnp.where(out > 0, out, a * out)
    return jnp.transpose(out, (0, 3, 1, 2))


if __name__ == "__main__":
    # Shapes consistent with the module: nIn=4, nOut=8, kSize=3, dilation=1, stride=1
    B, Cin, H, W = 2, 4, 16, 16
    Cout, K = 8, 3
    dilation = 1

    key = jax.random.PRNGKey(0)
    ks = jax.random.split(key, 10)

    x = jax.random.normal(ks[0], (B, Cin, H, W), dtype=jnp.float32)

    params = {
        # Involution2d internals (bias=False): initial_mapping, reduce_mapping, span_mapping
        "w_init":   0.3 * jax.random.normal(ks[1], (Cin, Cout), dtype=jnp.float32),
        "w_reduce": 0.3 * jax.random.normal(ks[2], (Cin, Cout), dtype=jnp.float32),
        "w_span":   0.3 * jax.random.normal(ks[3], (Cout, K * K), dtype=jnp.float32),
        # sigma_mapping BatchNorm2d(Cout) (eval-mode running stats)
        "bn1": (jax.random.uniform(ks[4], (Cout,), minval=0.5, maxval=1.5),   # gamma
                0.1 * jax.random.normal(ks[5], (Cout,)),                      # beta
                0.1 * jax.random.normal(ks[6], (Cout,)),                      # running_mean
                jax.random.uniform(ks[7], (Cout,), minval=0.5, maxval=1.5)),  # running_var
        # outer BatchNorm2d(Cout, eps=0.001)
        "bn2": (jax.random.uniform(ks[8], (Cout,), minval=0.5, maxval=1.5),
                0.1 * jax.random.normal(ks[9], (Cout,)),
                0.1 * jax.random.normal(ks[5], (Cout,)),
                jax.random.uniform(ks[4], (Cout,), minval=0.5, maxval=1.5)),
        # PReLU(Cout) default init a=0.25
        "prelu_a": jnp.full((Cout,), 0.25, dtype=jnp.float32),
    }

    fwd = functools.partial(ibr_dilated_forward, ksize=K, dilation=dilation)

    out = jax.block_until_ready(jax.jit(fwd)(x, params))
    ref = _reference(x, params, ksize=K, dilation=dilation)
    np.testing.assert_allclose(np.asarray(out), np.asarray(ref), rtol=1e-2, atol=1e-2)
    assert out.shape == (B, Cout, H, W)

    # Also exercise the identity initial_mapping specialization (Cin == Cout, w_init=None).
    x2 = jax.random.normal(ks[1], (B, Cout, H, W), dtype=jnp.float32)
    params2 = dict(params)
    params2["w_init"] = None
    params2["w_reduce"] = 0.3 * jax.random.normal(ks[2], (Cout, Cout), dtype=jnp.float32)
    out2 = jax.block_until_ready(jax.jit(fwd)(x2, params2))
    ref2 = _reference(x2, params2, ksize=K, dilation=dilation)
    np.testing.assert_allclose(np.asarray(out2), np.asarray(ref2), rtol=1e-2, atol=1e-2)

    print("KERNEL_OK")
</pallas_src>

<mosaic_0001>
module attributes {stable_mosaic.version = 11 : i64} {
  func.func @_ibr_kernel(%arg0: i32, %arg1: memref<1x4x422xf32, #tpu.memory_space<vmem>>, %arg2: memref<8x4xf32, #tpu.memory_space<vmem>>, %arg3: memref<8x4xf32, #tpu.memory_space<vmem>>, %arg4: memref<8x1xf32, #tpu.memory_space<vmem>>, %arg5: memref<9x8xf32, #tpu.memory_space<vmem>>, %arg6: memref<8x1xf32, #tpu.memory_space<vmem>>, %arg7: memref<8x1xf32, #tpu.memory_space<vmem>>, %arg8: memref<1x8x384xf32, #tpu.memory_space<vmem>>) attributes {dimension_semantics = [#tpu.dimension_semantics<parallel>], iteration_bounds = array<i64: 2>, scalar_prefetch = 0 : i64, scratch_operands = 0 : i64, tpu.core_type = #tpu.core_type<tc>, window_params = [{transform_indices = @transform_0, window_bounds = array<i64: 1, 4, 422>}, {pipeline_mode = #tpu.pipeline_mode<synchronous>, transform_indices = @transform_1, window_bounds = array<i64: 8, 4>}, {pipeline_mode = #tpu.pipeline_mode<synchronous>, transform_indices = @transform_2, window_bounds = array<i64: 8, 4>}, {pipeline_mode = #tpu.pipeline_mode<synchronous>, transform_indices = @transform_3, window_bounds = array<i64: 8, 1>}, {pipeline_mode = #tpu.pipeline_mode<synchronous>, transform_indices = @transform_4, window_bounds = array<i64: 9, 8>}, {pipeline_mode = #tpu.pipeline_mode<synchronous>, transform_indices = @transform_5, window_bounds = array<i64: 8, 1>}, {pipeline_mode = #tpu.pipeline_mode<synchronous>, transform_indices = @transform_6, window_bounds = array<i64: 8, 1>}, {transform_indices = @transform_7, window_bounds = array<i64: 1, 8, 384>}]} {
    %c0 = arith.constant 0 : index
    %c0_0 = arith.constant 0 : index
    %c0_1 = arith.constant 0 : index
    %0 = vector.load %arg1[%c0, %c0_0, %c0_1] : memref<1x4x422xf32, #tpu.memory_space<vmem>>, vector<1x4x422xf32>
    %1 = vector.shape_cast %0 : vector<1x4x422xf32> to vector<4x422xf32>
    %c0_2 = arith.constant 0 : index
    %c0_3 = arith.constant 0 : index
    %2 = vector.load %arg3[%c0_2, %c0_3] : memref<8x4xf32, #tpu.memory_space<vmem>>, vector<8x4xf32>
    %cst = arith.constant dense<0.000000e+00> : vector<8x422xf32>
    %3 = tpu.matmul %2, %1, %cst {dimension_numbers = #tpu.dot_dimension_numbers<[1], [0], [0], [1], [0, 0, 1, 1], [], []>} : vector<8x4xf32>, vector<4x422xf32>, vector<8x422xf32> -> vector<8x422xf32>
    %c0_4 = arith.constant 0 : index
    %c0_5 = arith.constant 0 : index
    %4 = vector.load %arg4[%c0_4, %c0_5] : memref<8x1xf32, #tpu.memory_space<vmem>>, vector<8x1xf32>
    %5 = vector.broadcast %4 : vector<8x1xf32> to vector<8x422xf32>
    %6 = arith.addf %3, %5 : vector<8x422xf32>
    %cst_6 = arith.constant 0.000000e+00 : f32
    %7 = vector.broadcast %cst_6 : f32 to vector<8x422xf32>
    %8 = arith.maximumf %6, %7 : vector<8x422xf32>
    %c0_7 = arith.constant 0 : index
    %c0_8 = arith.constant 0 : index
    %9 = vector.load %arg5[%c0_7, %c0_8] : memref<9x8xf32, #tpu.memory_space<vmem>>, vector<9x8xf32>
    %cst_9 = arith.constant dense<0.000000e+00> : vector<9x422xf32>
    %10 = tpu.matmul %9, %8, %cst_9 {dimension_numbers = #tpu.dot_dimension_numbers<[1], [0], [0], [1], [0, 0, 1, 1], [], []>} : vector<9x8xf32>, vector<8x422xf32>, vector<9x422xf32> -> vector<9x422xf32>
    %11 = vector.extract_strided_slice %10 {offsets = [0, 19], sizes = [9, 384], strides = [1, 1]} : vector<9x422xf32> to vector<9x384xf32>
    %c0_10 = arith.constant 0 : index
    %c0_11 = arith.constant 0 : index
    %12 = vector.load %arg2[%c0_10, %c0_11] : memref<8x4xf32, #tpu.memory_space<vmem>>, vector<8x4xf32>
    %cst_12 = arith.constant dense<0.000000e+00> : vector<8x422xf32>
    %13 = tpu.matmul %12, %1, %cst_12 {dimension_numbers = #tpu.dot_dimension_numbers<[1], [0], [0], [1], [0, 0, 1, 1], [], []>} : vector<8x4xf32>, vector<4x422xf32>, vector<8x422xf32> -> vector<8x422xf32>
    %cst_13 = arith.constant 0.000000e+00 : f32
    %14 = vector.broadcast %cst_13 : f32 to vector<8x384xf32>
    %15 = vector.extract_strided_slice %11 {offsets = [0, 0], sizes = [1, 384], strides = [1, 1]} : vector<9x384xf32> to vector<1x384xf32>
    %16 = vector.extract_strided_slice %13 {offsets = [0, 0], sizes = [8, 384], strides = [1, 1]} : vector<8x422xf32> to vector<8x384xf32>
    %17 = vector.broadcast %15 : vector<1x384xf32> to vector<8x384xf32>
    %18 = arith.mulf %17, %16 : vector<8x384xf32>
    %19 = arith.addf %14, %18 : vector<8x384xf32>
    %20 = vector.extract_strided_slice %11 {offsets = [1, 0], sizes = [1, 384], strides = [1, 1]} : vector<9x384xf32> to vector<1x384xf32>
    %21 = vector.extract_strided_slice %13 {offsets = [0, 1], sizes = [8, 384], strides = [1, 1]} : vector<8x422xf32> to vector<8x384xf32>
    %22 = vector.broadcast %20 : vector<1x384xf32> to vector<8x384xf32>
    %23 = arith.mulf %22, %21 : vector<8x384xf32>
    %24 = arith.addf %19, %23 : vector<8x384xf32>
    %25 = vector.extract_strided_slice %11 {offsets = [2, 0], sizes = [1, 384], strides = [1, 1]} : vector<9x384xf32> to vector<1x384xf32>
    %26 = vector.extract_strided_slice %13 {offsets = [0, 2], sizes = [8, 384], strides = [1, 1]} : vector<8x422xf32> to vector<8x384xf32>
    %27 = vector.broadcast %25 : vector<1x384xf32> to vector<8x384xf32>
    %28 = arith.mulf %27, %26 : vector<8x384xf32>
    %29 = arith.addf %24, %28 : vector<8x384xf32>
    %30 = vector.extract_strided_slice %11 {offsets = [3, 0], sizes = [1, 384], strides = [1, 1]} : vector<9x384xf32> to vector<1x384xf32>
    %31 = vector.extract_strided_slice %13 {offsets = [0, 18], sizes = [8, 384], strides = [1, 1]} : vector<8x422xf32> to vector<8x384xf32>
    %32 = vector.broadcast %30 : vector<1x384xf32> to vector<8x384xf32>
    %33 = arith.mulf %32, %31 : vector<8x384xf32>
    %34 = arith.addf %29, %33 : vector<8x384xf32>
    %35 = vector.extract_strided_slice %11 {offsets = [4, 0], sizes = [1, 384], strides = [1, 1]} : vector<9x384xf32> to vector<1x384xf32>
    %36 = vector.extract_strided_slice %13 {offsets = [0, 19], sizes = [8, 384], strides = [1, 1]} : vector<8x422xf32> to vector<8x384xf32>
    %37 = vector.broadcast %35 : vector<1x384xf32> to vector<8x384xf32>
    %38 = arith.mulf %37, %36 : vector<8x384xf32>
    %39 = arith.addf %34, %38 : vector<8x384xf32>
    %40 = vector.extract_strided_slice %11 {offsets = [5, 0], sizes = [1, 384], strides = [1, 1]} : vector<9x384xf32> to vector<1x384xf32>
    %41 = vector.extract_strided_slice %13 {offsets = [0, 20], sizes = [8, 384], strides = [1, 1]} : vector<8x422xf32> to vector<8x384xf32>
    %42 = vector.broadcast %40 : vector<1x384xf32> to vector<8x384xf32>
    %43 = arith.mulf %42, %41 : vector<8x384xf32>
    %44 = arith.addf %39, %43 : vector<8x384xf32>
    %45 = vector.extract_strided_slice %11 {offsets = [6, 0], sizes = [1, 384], strides = [1, 1]} : vector<9x384xf32> to vector<1x384xf32>
    %46 = vector.extract_strided_slice %13 {offsets = [0, 36], sizes = [8, 384], strides = [1, 1]} : vector<8x422xf32> to vector<8x384xf32>
    %47 = vector.broadcast %45 : vector<1x384xf32> to vector<8x384xf32>
    %48 = arith.mulf %47, %46 : vector<8x384xf32>
    %49 = arith.addf %44, %48 : vector<8x384xf32>
    %50 = vector.extract_strided_slice %11 {offsets = [7, 0], sizes = [1, 384], strides = [1, 1]} : vector<9x384xf32> to vector<1x384xf32>
    %51 = vector.extract_strided_slice %13 {offsets = [0, 37], sizes = [8, 384], strides = [1, 1]} : vector<8x422xf32> to vector<8x384xf32>
    %52 = vector.broadcast %50 : vector<1x384xf32> to vector<8x384xf32>
    %53 = arith.mulf %52, %51 : vector<8x384xf32>
    %54 = arith.addf %49, %53 : vector<8x384xf32>
    %55 = vector.extract_strided_slice %11 {offsets = [8, 0], sizes = [1, 384], strides = [1, 1]} : vector<9x384xf32> to vector<1x384xf32>
    %56 = vector.extract_strided_slice %13 {offsets = [0, 38], sizes = [8, 384], strides = [1, 1]} : vector<8x422xf32> to vector<8x384xf32>
    %57 = vector.broadcast %55 : vector<1x384xf32> to vector<8x384xf32>
    %58 = arith.mulf %57, %56 : vector<8x384xf32>
    %59 = arith.addf %54, %58 : vector<8x384xf32>
    %c0_14 = arith.constant 0 : index
    %c0_15 = arith.constant 0 : index
    %60 = vector.load %arg6[%c0_14, %c0_15] : memref<8x1xf32, #tpu.memory_space<vmem>>, vector<8x1xf32>
    %61 = vector.broadcast %60 : vector<8x1xf32> to vector<8x384xf32>
    %62 = arith.addf %59, %61 : vector<8x384xf32>
    %cst_16 = arith.constant 0.000000e+00 : f32
    %63 = vector.broadcast %cst_16 : f32 to vector<8x384xf32>
    %64 = arith.cmpf ogt, %62, %63 : vector<8x384xf32>
    %c0_17 = arith.constant 0 : index
    %c0_18 = arith.constant 0 : index
    %65 = vector.load %arg7[%c0_17, %c0_18] : memref<8x1xf32, #tpu.memory_space<vmem>>, vector<8x1xf32>
    %66 = vector.broadcast %65 : vector<8x1xf32> to vector<8x384xf32>
    %67 = arith.mulf %66, %62 : vector<8x384xf32>
    %68 = arith.select %64, %62, %67 : vector<8x384xi1>, vector<8x384xf32>
    %c0_19 = arith.constant 0 : index
    %c0_20 = arith.constant 0 : index
    %c0_21 = arith.constant 0 : index
    %69 = vector.load %arg8[%c0_19, %c0_20, %c0_21] : memref<1x8x384xf32, #tpu.memory_space<vmem>>, vector<1x8x384xf32>
    %70 = vector.shape_cast %69 : vector<1x8x384xf32> to vector<8x384xf32>
    %71 = vector.shape_cast %68 : vector<8x384xf32> to vector<1x8x384xf32>
    tpu.vector_store %arg8[%c0_19, %c0_20, %c0_21], %71 {strides = array<i32>} : memref<1x8x384xf32, #tpu.memory_space<vmem>>, vector<1x8x384xf32>,
    return
  }
  func.func @transform_0(%arg0: i32) -> (i32, i32, i32) {
    %c0_i32 = arith.constant 0 : i32
    %c0_i32_0 = arith.constant 0 : i32
    %c0_i32_1 = arith.constant 0 : i32
    return %arg0, %c0_i32, %c0_i32_0 : i32, i32, i32
  }
  func.func @transform_1(%arg0: i32) -> (i32, i32) {
    %c0_i32 = arith.constant 0 : i32
    %c0_i32_0 = arith.constant 0 : i32
    %c0_i32_1 = arith.constant 0 : i32
    return %c0_i32, %c0_i32_0 : i32, i32
  }
  func.func @transform_2(%arg0: i32) -> (i32, i32) {
    %c0_i32 = arith.constant 0 : i32
    %c0_i32_0 = arith.constant 0 : i32
    %c0_i32_1 = arith.constant 0 : i32
    return %c0_i32, %c0_i32_0 : i32, i32
  }
  func.func @transform_3(%arg0: i32) -> (i32, i32) {
    %c0_i32 = arith.constant 0 : i32
    %c0_i32_0 = arith.constant 0 : i32
    %c0_i32_1 = arith.constant 0 : i32
    return %c0_i32, %c0_i32_0 : i32, i32
  }
  func.func @transform_4(%arg0: i32) -> (i32, i32) {
    %c0_i32 = arith.constant 0 : i32
    %c0_i32_0 = arith.constant 0 : i32
    %c0_i32_1 = arith.constant 0 : i32
    return %c0_i32, %c0_i32_0 : i32, i32
  }
  func.func @transform_5(%arg0: i32) -> (i32, i32) {
    %c0_i32 = arith.constant 0 : i32
    %c0_i32_0 = arith.constant 0 : i32
    %c0_i32_1 = arith.constant 0 : i32
    return %c0_i32, %c0_i32_0 : i32, i32
  }
  func.func @transform_6(%arg0: i32) -> (i32, i32) {
    %c0_i32 = arith.constant 0 : i32
    %c0_i32_0 = arith.constant 0 : i32
    %c0_i32_1 = arith.constant 0 : i32
    return %c0_i32, %c0_i32_0 : i32, i32
  }
  func.func @transform_7(%arg0: i32) -> (i32, i32, i32) {
    %c0_i32 = arith.constant 0 : i32
    %c0_i32_0 = arith.constant 0 : i32
    %c0_i32_1 = arith.constant 0 : i32
    return %arg0, %c0_i32, %c0_i32_0 : i32, i32, i32
  }
}

</mosaic_0001>

<bundles_post_ra>
// kernel: ibr_dilated_forward.1
= control target key start
LH: loop header
LB: loop body
LE: loop exit
PB: predicated region body
PF: predicated region fallthrough
CT: control target
= control target key end

     0   :  { %s1047_s24 = smov 0   ;;  %s1264_s0 = inlined_call_operand.vmem [shape: f32[2,4,422], index: 0, kind: input, shape index: {}]   ;;  %s1265_s1 = inlined_call_operand.vmem [shape: f32[8,4], index: 1, kind: input, shape index: {}]   ;;  %s1266_s2 = inlined_call_operand.vmem [shape: f32[8,4], index: 2, kind: input, shape index: {}]   ;;  %s1267_s3 = inlined_call_operand.vmem [shape: f32[8,1], index: 3, kind: input, shape index: {}]   ;;  %s1268_s4 = inlined_call_operand.vmem [shape: f32[9,8], index: 4, kind: input, shape index: {}]   ;;  %s1269_s5 = inlined_call_operand.vmem [shape: f32[8,1], index: 5, kind: input, shape index: {}]   ;;  %s1270_s6 = inlined_call_operand.vmem [shape: f32[8,1], index: 6, kind: input, shape index: {}]   ;;  %s1271_s7 = inlined_call_operand.vmem [shape: f32[2,8,384], index: 7, kind: output, shape index: {}]  }
   0x1 LB: > { %s935_s25 = sadd.s32 4294967295, %s996_s24   ;;  %p939_p0 = scmp.ge.s32.totalorder %s996_s24, 1  ;;  %s996_s24 = sphi %s1047_s24, %s17_s24  }
   0x2   : > { %p237_p1 = scmp.lt.s32.totalorder %s996_s24, 3 }
   0x4   : > { %p238_p2 = pnand %p939_p0, %p237_p1 }
   0x5   : > { %p269_p3 = scmp.lt.s32.totalorder (!%p238_p2), %s935_s25, 1  ;;  %s999_s17 = smov (!%p238_p2), 18  }
   0x6   : > { %241 = sbr.rel (%p238_p2) target bundleno = 621 (0x26d), region = 48  ;;  %s1000_s18 = smov (!%p238_p2), 19  }
   0x7   : > { %s1001_s19 = smov (!%p238_p2), 17   ;;  %s1002_s20 = smov (!%p238_p2), 1  }
   0x8   : > { %s1003_s21 = smov (!%p238_p2), 127   ;;  %s1004_s22 = smov (!%p238_p2), 111  }
   0x9   : > { %s1005_s23 = smov (!%p238_p2), 110   ;;  %s1006_s26 = smov (!%p238_p2), 109  }
   0xb   : > { %v282_v0 = vld [vmem:[%s1267_s3] sm:$0xff]  ;;  %v998_v1 = vmov 0   ;;  %s1273_s25 = smov (!%p269_p3, %s935_s25), 1  ;;  %vm301_vm0 = vcmask 1043456   ;;  %vm297_vm1 = vcmask 31744   ;;  %vm396_vm2 = vcmask 64512  }
   0xc   : > { %988 = vset.pattern.permute.xlu0 %v998_v1  ;;  %989 = vset.pattern.permute.xlu2 %v998_v1  ;;  %s969_s28 = sshll.u32 %s1273_s25, 4  ;;  %v281_v4 = vld [vmem:[%s1266_s2] sm:$0xff]  ;;  %v395_v25 = vld [vmem:[%s1268_s4 + $0x8] sm:$0x1]  ;;  %vm635_vm3 = vcmask 146432   ;;  %vm607_vm4 = vcmask 154624  }
   0xd   : > { %285 = vperm.xlu0 %988, %v282_v0   ;;  %s273_s8 = scalar_lea.vmem %s1264_s0, %s969_s28  ;;  %v394_v15 = vld [vmem:[%s1268_s4] sm:$0xff]  ;;  %vm663_vm5 = vcmask 138240   ;;  %vm691_vm6 = vcmask 7168   ;;  %vm731_vm7 = vcmask 1039360   ;;  %vm759_vm8 = vcmask 908288  }
   0xe   : > { %v279_v2 = vld [vmem:[%s273_s8] sm:$0xff]  ;;  %v280_v3 = vld [vmem:[%s273_s8 + $0x8] sm:$0xff]  ;;  %vm787_vm9 = vcmask 900096   ;;  %vm815_vm10 = vcmask 891904   ;;  %s970_s8 = smul.u32 24, %s1273_s25 }
   0xf   : > { %290 = vst [vmem:[#allocation1] ss:$2 sm:$0xff] %v279_v2  ;;  %v495_v28 = vld [vmem:[%s1265_s1] sm:$0xff] }
  0x10   : > { %292 = vst [vmem:[#allocation1 + $0x10] ss:$2 sm:$0xff] %v280_v3  ;;  %v831_v47 = vld [vmem:[%s1269_s5] sm:$0xff]  ;;  %s278_s11 = scalar_lea.vmem %s1271_s7, %s970_s8 }
  0x11   : > { %v845_v48 = vld [vmem:[%s1270_s6] sm:$0xff] }
  0x16   : > { %v293_v5 = vld.sshfl [vmem:[#allocation1] sm:$0xff pattern:$0x75316420]  ;;  %v294_v6 = vld.sshfl [vmem:[#allocation1 + $0x8] sm:$0xff pattern:$0x75316420] }
  0x17   : > { %943 = vmatpush.msk.msra.mxu0 %vm301_vm0, %v293_v5  ;;  %945 = vmatpush.msk.msra.mxu1 %vm301_vm0, %v294_v6  ;;  %496 = vst [vmem:[#allocation1] ss:$2 sm:$0xff] %v279_v2  ;;  %v295_v7 = vld.sshfl [vmem:[#allocation1 + $0x10] sm:$0xff pattern:$0x75316420] }
  0x18   : > { %947 = vmatpush.msk.msra.mxu2 %vm301_vm0, %v295_v7  ;;  %v296_v8 = vld.sshfl [vmem:[#allocation1 + $0x18] sm:$0xff pattern:$0x75316420]  ;;  %944 = vmatmul.msk.f32.vlgmr.msra.gmra.mxu0 %vm297_vm1, %v281_v4 }
  0x19   : > { %949 = vmatpush.msk.msra.mxu3 %vm301_vm0, %v296_v8  ;;  %498 = vst [vmem:[#allocation1 + $0x10] ss:$2 sm:$0xff] %v280_v3  ;;  %946 = vmatmul.msk.f32.vlgmr.msra.gmra.mxu1 %vm297_vm1, %v281_v4 }
  0x1a   : > { %948 = vmatmul.msk.f32.vlgmr.msra.gmra.mxu2 %vm297_vm1, %v281_v4  ;;  %950 = vmatmul.msk.f32.vlgmr.msra.gmra.mxu3 %vm297_vm1, %v281_v4 }
  0x1e   : > { %v499_v17 = vld.sshfl [vmem:[#allocation1] sm:$0xff pattern:$0x75316420]  ;;  %v500_v18 = vld.sshfl [vmem:[#allocation1 + $0x8] sm:$0xff pattern:$0x75316420] }
  0x20   : > { %v501_v26 = vld.sshfl [vmem:[#allocation1 + $0x10] sm:$0xff pattern:$0x75316420]  ;;  %v502_v27 = vld.sshfl [vmem:[#allocation1 + $0x18] sm:$0xff pattern:$0x75316420] }
  0x7f   : > { %v286_v9 = vpop.permute.xlu0 %285 }
  0x95   : > { %v327_v10 = vpop.f32.mrf.mxu0 }
  0x96   : > { %v328_v11 = vadd.f32 %v327_v10, %v286_v9  ;;  %v347_v12 = vpop.f32.mrf.mxu1 }
  0x97   : > { %v348_v13 = vadd.f32 %v347_v12, %v286_v9 }
  0x98   : > { %v390_v14 = vmax.f32 %v328_v11, 0.0 }
  0x99   : > { %v391_v16 = vmax.f32 %v348_v13, 0.0 }
  0x9a   : > { %418 = vmatpush.msrb.mxu0 %v390_v14 }
  0x9b   : > { %441 = vmatpush.msrb.mxu1 %v391_v16  ;;  %951 = vmatmul.msk.f32.vlgmr.msrb.gmra.mxu0 %vm396_vm2, %v394_v15 }
  0x9c   : > { %953 = vmatmul.msk.f32.vlgmr.msrb.gmra.mxu1 %vm396_vm2, %v394_v15  ;;  %959 = vmatpush.msk.msra.mxu0 %vm301_vm0, %v499_v17 }
  0x9d   : > { %v367_v19 = vpop.f32.mrf.mxu2  ;;  %v387_v20 = vpop.f32.mrf.mxu3  ;;  %961 = vmatpush.msk.msra.mxu1 %vm301_vm0, %v500_v18 }
  0x9e   : > { %v368_v21 = vadd.f32 %v367_v19, %v286_v9  ;;  %v388_v22 = vadd.f32 %v387_v20, %v286_v9 }
  0xa0   : > { %v392_v23 = vmax.f32 %v368_v21, 0.0  ;;  %v393_v24 = vmax.f32 %v388_v22, 0.0 }
  0xa2   : > { %464 = vmatpush.msrb.mxu2 %v392_v23  ;;  %487 = vmatpush.msrb.mxu3 %v393_v24 }
  0xa3   : > { %952 = vmatmul.msk.f32.gmra.mxu0 %vm396_vm2, %v395_v25  ;;  %955 = vmatmul.msk.f32.vlgmr.msrb.gmra.mxu2 %vm396_vm2, %v394_v15 }
  0xa4   : > { %954 = vmatmul.msk.f32.gmra.mxu1 %vm396_vm2, %v395_v25  ;;  %957 = vmatmul.msk.f32.vlgmr.msrb.gmra.mxu3 %vm396_vm2, %v394_v15 }
  0xa5   : > { %963 = vmatpush.msk.msra.mxu2 %vm301_vm0, %v501_v26  ;;  %965 = vmatpush.msk.msra.mxu3 %vm301_vm0, %v502_v27 }
  0xab   : > { %960 = vmatmul.msk.f32.vlgmr.msra.gmra.mxu0 %vm297_vm1, %v495_v28  ;;  %956 = vmatmul.msk.f32.gmra.mxu2 %vm396_vm2, %v395_v25 }
  0xac   : > { %962 = vmatmul.msk.f32.vlgmr.msra.gmra.mxu1 %vm297_vm1, %v495_v28  ;;  %958 = vmatmul.msk.f32.gmra.mxu3 %vm396_vm2, %v395_v25 }
  0xb3   : > { %964 = vmatmul.msk.f32.vlgmr.msra.gmra.mxu2 %vm297_vm1, %v495_v28 }
  0xb4   : > { %966 = vmatmul.msk.f32.vlgmr.msra.gmra.mxu3 %vm297_vm1, %v495_v28 }
 0x118   : > { %v1100_v29 = vpop.f32.mrf.mxu0 }
 0x119   : > { %v1102_v30 = vpop.f32.mrf.mxu1  ;;  %v707_v34 = vperm.slane %v1100_v29, 4  ;;  %v594_v62 = vperm.slane %v1100_v29, 0  ;;  %v622_v1 = vperm.slane %v1100_v29, 1  ;;  %v651_v8 = vperm.slane %v1100_v29, 2 }
 0x11a   : > { %v708_v36 = vperm.slane %v1102_v30, 4  ;;  %v623_v50 = vperm.slane %v1102_v30, 1  ;;  %v595_v57 = vperm.slane %v1102_v30, 0  ;;  %v652_v63 = vperm.slane %v1102_v30, 2 }
 0x11b   : > { %v679_v12 = vperm.slane %v1100_v29, 3  ;;  %v680_v13 = vperm.slane %v1102_v30, 3  ;;  %v719_v21 = vperm.slane %v1100_v29, 5  ;;  %v747_v28 = vperm.slane %v1100_v29, 6 }
 0x120   : > { %v1104_v31 = vpop.f32.mrf.mxu0 }
 0x121   : > { %v1106_v32 = vpop.f32.mrf.mxu1 }
 0x126   : > { %v1108_v33 = vpop.f32.mrf.mxu2 }
 0x127   : > { %v709_v41 = vperm.slane %v1108_v33, 4  ;;  %v1127_v44 = vpop.f32.mrf.mxu3 }
 0x128   : > { %v531_v35 = vpop.f32.mrf.mxu0 }
 0x129   : > { %v551_v37 = vpop.f32.mrf.mxu1  ;;  %627 = vrot.lane.b32.xlu2 %v531_v35, %s999_s17  ;;  %601 = vrot.lane.b32.xlu0 %v531_v35, %s1000_s18  ;;  %v1114_v38 = vmul.f32 %v707_v34, %v531_v35 }
 0x12a   : > { %603 = vrot.lane.b32.xlu1 %v551_v37, %s1000_s18  ;;  %v1117_v39 = vmul.f32 %v708_v36, %v551_v37 }
 0x12e   : > { %v1119_v40 = vpop.f32.mrf.mxu2 }
 0x12f   : > { %v1130_v45 = vpop.f32.mrf.mxu3 }
 0x131   : > { %629 = vrot.lane.b32.xlu2 %v551_v37, %s999_s17  ;;  %657 = vrot.lane.b32.xlu0 %v551_v37, %s1001_s19 }
 0x132   : > { %685 = vrot.lane.b32.xlu1 %v551_v37, %s1002_s20 }
 0x136   : > { %v571_v42 = vpop.f32.mrf.mxu2 }
 0x137   : > { %v1124_v43 = vmul.f32 %v709_v41, %v571_v42  ;;  %v1135_v46 = vpop.f32.mrf.mxu3 }
 0x139   : > { %655 = vrot.lane.b32.xlu2 %v531_v35, %s1001_s19  ;;  %683 = vrot.lane.b32.xlu0 %v531_v35, %s1002_s20 }
 0x13a   : > { %723 = vrot.lane.b32.xlu1 %v531_v35, %s1003_s21 }
 0x141   : > { %725 = vrot.lane.b32.xlu2 %v551_v37, %s1003_s21  ;;  %753 = vrot.lane.b32.xlu0 %v551_v37, %s1004_s22 }
 0x142   : > { %781 = vrot.lane.b32.xlu1 %v551_v37, %s1005_s23 }
 0x149   : > { %751 = vrot.lane.b32.xlu2 %v531_v35, %s1004_s22  ;;  %779 = vrot.lane.b32.xlu0 %v531_v35, %s1005_s23 }
 0x14a   : > { %807 = vrot.lane.b32.xlu1 %v531_v35, %s1006_s26 }
 0x151   : > { %809 = vrot.lane.b32.xlu2 %v551_v37, %s1006_s26  ;;  %631 = vrot.lane.b32.xlu0 %v571_v42, %s999_s17 }
 0x152   : > { %605 = vrot.lane.b32.xlu1 %v571_v42, %s1000_s18 }
 0x159   : > { %661 = vrot.lane.b32.xlu2 %v1135_v46, %s1001_s19  ;;  %689 = vrot.lane.b32.xlu0 %v1135_v46, %s1002_s20 }
 0x15a   : > { %633 = vrot.lane.b32.xlu1 %v1135_v46, %s999_s17 }
 0x161   : > { %687 = vrot.lane.b32.xlu2 %v571_v42, %s1002_s20  ;;  %727 = vrot.lane.b32.xlu0 %v571_v42, %s1003_s21 }
 0x162   : > { %659 = vrot.lane.b32.xlu1 %v571_v42, %s1001_s19 }
 0x169   : > { %757 = vrot.lane.b32.xlu2 %v1135_v46, %s1004_s22  ;;  %785 = vrot.lane.b32.xlu0 %v1135_v46, %s1005_s23 }
 0x16a   : > { %729 = vrot.lane.b32.xlu1 %v1135_v46, %s1003_s21 }
 0x171   : > { %783 = vrot.lane.b32.xlu2 %v571_v42, %s1005_s23  ;;  %811 = vrot.lane.b32.xlu0 %v571_v42, %s1006_s26 }
 0x172   : > { %755 = vrot.lane.b32.xlu1 %v571_v42, %s1004_s22 }
 0x179   : > { %834 = vperm.xlu2 %989, %v831_v47   ;;  %848 = vperm.xlu0 %988, %v845_v48  }
 0x17a   : > { %813 = vrot.lane.b32.xlu1 %v1135_v46, %s1006_s26 }
 0x183   : > { %v628_v49 = vpop.permute.xlu2 %627 }
 0x184   : > { %v643_v6 = vmul.f32 %v628_v49, %v622_v1 }
 0x18b   : > { %v1156_v51 = vpop.permute.xlu2 %629 }
 0x18c   : > { %v636_v52 = vsel %vm635_vm3, %v628_v49, %v1156_v51  ;;  %v803_v49 = vperm.slane %v1104_v31, 0 }
 0x18d   : > { %v644_v53 = vmul.f32 %v636_v52, %v623_v50 }
 0x193   : > { %v656_v54 = vpop.permute.xlu2 %655 }
 0x194   : > { %v671_v10 = vmul.f32 %v656_v54, %v651_v8  ;;  %v625_v8 = vperm.slane %v1127_v44, 1 }
 0x19b   : > { %v602_v55 = vpop.permute.xlu0 %601  ;;  %v1165_v60 = vpop.permute.xlu2 %725 }
 0x19c   : > { %v1160_v56 = vpop.permute.xlu1 %603  ;;  %v614_v2 = vmul.f32 %v602_v55, %v594_v62 }
 0x19d   : > { %v608_v58 = vsel %vm607_vm4, %v602_v55, %v1160_v56 }
 0x19e   : > { %v615_v59 = vmul.f32 %v608_v58, %v595_v57  ;;  %v647_v9 = vadd.f32 %v643_v6, %v614_v2  ;;  %v624_v58 = vperm.slane %v1108_v33, 1 }
 0x1a0   : > { %v648_v61 = vadd.f32 %v644_v53, %v615_v59  ;;  %v675_v16 = vadd.f32 %v671_v10, %v647_v9  ;;  %v597_v10 = vperm.slane %v1127_v44, 0 }
 0x1a3   : > { %v1169_v0 = vpop.permute.xlu0 %657  ;;  %v752_v11 = vpop.permute.xlu2 %751 }
 0x1a4   : > { %v1172_v3 = vpop.permute.xlu1 %685  ;;  %v664_v4 = vsel %vm663_vm5, %v656_v54, %v1169_v0 }
 0x1a5   : > { %v672_v5 = vmul.f32 %v664_v4, %v652_v63 }
 0x1a7   : > { %v676_v7 = vadd.f32 %v672_v5, %v648_v61 }
 0x1ab   : > { %v684_v14 = vpop.permute.xlu0 %683  ;;  %v1189_v35 = vpop.permute.xlu2 %809 }
 0x1ac   : > { %v724_v15 = vpop.permute.xlu1 %723  ;;  %v692_v17 = vsel %vm691_vm6, %v684_v14, %v1172_v3  ;;  %v699_v18 = vmul.f32 %v684_v14, %v679_v12  ;;  %v720_v12 = vperm.slane %v1102_v30, 5  ;;  %v654_v14 = vperm.slane %v1127_v44, 2 }
 0x1ad   : > { %v732_v19 = vsel %vm731_vm7, %v724_v15, %v1165_v60  ;;  %v700_v20 = vmul.f32 %v692_v17, %v680_v13  ;;  %v653_v13 = vperm.slane %v1108_v33, 2 }
 0x1ae   : > { %v703_v22 = vadd.f32 %v699_v18, %v675_v16  ;;  %v739_v24 = vmul.f32 %v732_v19, %v719_v21  ;;  %v681_v21 = vperm.slane %v1108_v33, 3 }
 0x1af   : > { %v704_v23 = vadd.f32 %v700_v20, %v676_v7 }
 0x1b0   : > { %v715_v25 = vadd.f32 %v1114_v38, %v703_v22  ;;  %v775_v38 = vperm.slane %v1100_v29, 7  ;;  %v596_v29 = vperm.slane %v1108_v33, 0 }
 0x1b1   : > { %v716_v26 = vadd.f32 %v1117_v39, %v704_v23 }
 0x1b2   : > { %v743_v27 = vadd.f32 %v739_v24, %v715_v25 }
 0x1b3   : > { %v1187_v34 = vpop.permute.xlu0 %753  ;;  %v662_v53 = vpop.permute.xlu2 %661 }
 0x1b4   : > { %v1191_v36 = vpop.permute.xlu1 %781  ;;  %v760_v37 = vsel %vm759_vm8, %v752_v11, %v1187_v34 }
 0x1b5   : > { %v767_v41 = vmul.f32 %v760_v37, %v747_v28  ;;  %v682_v37 = vperm.slane %v1127_v44, 3 }
 0x1b7   : > { %v771_v42 = vadd.f32 %v767_v41, %v743_v27 }
 0x1bb   : > { %v780_v47 = vpop.permute.xlu0 %779  ;;  %v688_v2 = vpop.permute.xlu2 %687 }
 0x1bc   : > { %v808_v39 = vpop.permute.xlu1 %807  ;;  %v788_v48 = vsel %vm787_vm9, %v780_v47, %v1191_v36 }
 0x1bd   : > { %v816_v50 = vsel %vm815_vm10, %v808_v39, %v1189_v35  ;;  %v795_v52 = vmul.f32 %v788_v48, %v775_v38  ;;  %v721_v39 = vperm.slane %v1108_v33, 5 }
 0x1be   : > { %v823_v54 = vmul.f32 %v816_v50, %v803_v49 }
 0x1bf   : > { %v799_v55 = vadd.f32 %v795_v52, %v771_v42 }
 0x1c1   : > { %v1201_v57 = vadd.f32 %v823_v54, %v799_v55  ;;  %v722_v54 = vperm.slane %v1127_v44, 5 }
 0x1c3   : > { %v632_v59 = vpop.permute.xlu0 %631  ;;  %v758_v9 = vpop.permute.xlu2 %757 }
 0x1c4   : > { %v606_v61 = vpop.permute.xlu1 %605  ;;  %v637_v62 = vsel %vm635_vm3, %v1156_v51, %v632_v59 }
 0x1c5   : > { %v609_v31 = vsel %vm607_vm4, %v1160_v56, %v606_v61  ;;  %v645_v63 = vmul.f32 %v637_v62, %v624_v58  ;;  %v693_v56 = vsel %vm691_vm6, %v1172_v3, %v688_v2  ;;  %v617_v17 = vmul.f32 %v606_v61, %v597_v10 }
 0x1c6   : > { %v616_v1 = vmul.f32 %v609_v31, %v596_v29  ;;  %v701_v25 = vmul.f32 %v693_v56, %v681_v21  ;;  %v750_v61 = vperm.slane %v1127_v44, 6  ;;  %v748_v31 = vperm.slane %v1102_v30, 6 }
 0x1c7   : > { %v804_v10 = vperm.slane %v1106_v32, 0 }
 0x1c8   : > { %v649_v4 = vadd.f32 %v645_v63, %v616_v1 }
 0x1cb   : > { %v690_v5 = vpop.permute.xlu0 %689  ;;  %v784_v47 = vpop.permute.xlu2 %783 }
 0x1cc   : > { %v634_v6 = vpop.permute.xlu1 %633  ;;  %v694_v27 = vsel %vm691_vm6, %v688_v2, %v690_v5  ;;  %v789_v62 = vsel %vm787_vm9, %v1191_v36, %v784_v47  ;;  %v776_v5 = vperm.slane %v1102_v30, 7  ;;  %v778_v30 = vperm.slane %v1127_v44, 7 }
 0x1cd   : > { %v638_v7 = vsel %vm635_vm3, %v632_v59, %v634_v6  ;;  %v702_v42 = vmul.f32 %v694_v27, %v682_v37 }
 0x1ce   : > { %v646_v11 = vmul.f32 %v638_v7, %v625_v8  ;;  %v777_v7 = vperm.slane %v1108_v33, 7 }
 0x1d0   : > { %v650_v3 = vadd.f32 %v646_v11, %v617_v17  ;;  %v770_v11 = vmul.f32 %v758_v9, %v750_v61 }
 0x1d3   : > { %v728_v51 = vpop.permute.xlu0 %727  ;;  %v835_v6 = vpop.permute.xlu2 %834 }
 0x1d4   : > { %v660_v15 = vpop.permute.xlu1 %659  ;;  %v733_v16 = vsel %vm731_vm7, %v1165_v60, %v728_v51 }
 0x1d5   : > { %v665_v18 = vsel %vm663_vm5, %v1169_v0, %v660_v15  ;;  %v666_v19 = vsel %vm663_vm5, %v660_v15, %v662_v53  ;;  %v740_v20 = vmul.f32 %v733_v16, %v720_v12  ;;  %v710_v0 = vperm.slane %v1127_v44, 4 }
 0x1d6   : > { %v673_v22 = vmul.f32 %v665_v18, %v653_v13  ;;  %v674_v23 = vmul.f32 %v666_v19, %v654_v14  ;;  %v806_v18 = vperm.slane %v1130_v45, 0 }
 0x1d7   : > { %v744_v24 = vadd.f32 %v740_v20, %v716_v26  ;;  %v714_v53 = vmul.f32 %v710_v0, %v1135_v46 }
 0x1d8   : > { %v677_v28 = vadd.f32 %v673_v22, %v649_v4  ;;  %v678_v60 = vadd.f32 %v674_v23, %v650_v3 }
 0x1da   : > { %v705_v41 = vadd.f32 %v701_v25, %v677_v28  ;;  %v706_v50 = vadd.f32 %v702_v42, %v678_v60 }
 0x1db   : > { %v786_v38 = vpop.permute.xlu0 %785 }
 0x1dc   : > { %v730_v48 = vpop.permute.xlu1 %729  ;;  %v717_v49 = vadd.f32 %v1124_v43, %v705_v41  ;;  %v718_v58 = vadd.f32 %v714_v53, %v706_v50  ;;  %v749_v43 = vperm.slane %v1108_v33, 6  ;;  %v790_v2 = vsel %vm787_vm9, %v784_v47, %v786_v38 }
 0x1dd   : > { %v734_v26 = vsel %vm731_vm7, %v728_v51, %v730_v48  ;;  %v742_v59 = vmul.f32 %v730_v48, %v722_v54  ;;  %v796_v51 = vmul.f32 %v789_v62, %v776_v5  ;;  %v797_v56 = vmul.f32 %v790_v2, %v777_v7 }
 0x1de   : > { %v741_v52 = vmul.f32 %v734_v26, %v721_v39  ;;  %v798_v19 = vmul.f32 %v786_v38, %v778_v30 }
 0x1df   : > { %v746_v1 = vadd.f32 %v742_v59, %v718_v58 }
 0x1e0   : > { %v745_v55 = vadd.f32 %v741_v52, %v717_v49 }
 0x1e1   : > { %v774_v15 = vadd.f32 %v770_v11, %v746_v1 }
 0x1e3   : > { %v812_v29 = vpop.permute.xlu0 %811  ;;  %v802_v22 = vadd.f32 %v798_v19, %v774_v15 }
 0x1e4   : > { %v756_v63 = vpop.permute.xlu1 %755  ;;  %v817_v12 = vsel %vm815_vm10, %v1189_v35, %v812_v29 }
 0x1e5   : > { %v761_v46 = vsel %vm759_vm8, %v1187_v34, %v756_v63  ;;  %v762_v4 = vsel %vm759_vm8, %v756_v63, %v758_v9  ;;  %v837_v34 = vadd.f32 %v835_v6, %v1201_v57  ;;  %v824_v17 = vmul.f32 %v817_v12, %v804_v10 }
 0x1e6   : > { %v768_v8 = vmul.f32 %v761_v46, %v748_v31  ;;  %v769_v36 = vmul.f32 %v762_v4, %v749_v43  ;;  %v805_v9 = vperm.slane %v1119_v40, 0 }
 0x1e7   : > { %vm841_vm11 = vcmp.gt.f32.partialorder %v837_v34, 0.0 }
 0x1e8   : > { %v772_v13 = vadd.f32 %v768_v8, %v744_v24  ;;  %v773_v14 = vadd.f32 %v769_v36, %v745_v55 }
 0x1ea   : > { %v800_v16 = vadd.f32 %v796_v51, %v772_v13  ;;  %v801_v33 = vadd.f32 %v797_v56, %v773_v14 }
 0x1eb   : > { %v849_v32 = vpop.permute.xlu0 %848 }
 0x1ec   : > { %v828_v20 = vadd.f32 %v824_v17, %v800_v16  ;;  %v814_v35 = vpop.permute.xlu1 %813  ;;  %v851_v21 = vmul.f32 %v849_v32, %v837_v34 }
 0x1ed   : > { %v818_v23 = vsel %vm815_vm10, %v812_v29, %v814_v35  ;;  %v826_v3 = vmul.f32 %v814_v35, %v806_v18 }
 0x1ee   : > { %v838_v57 = vadd.f32 %v835_v6, %v828_v20  ;;  %v825_v24 = vmul.f32 %v818_v23, %v805_v9  ;;  %v855_v44 = vsel %vm841_vm11, %v837_v34, %v851_v21 }
 0x1ef   : > { %v830_v25 = vadd.f32 %v826_v3, %v802_v22  ;;  %863 = vrot.lane.b32.xlu1 %v855_v44, %s1006_s26 }
 0x1f0   : > { %v829_v45 = vadd.f32 %v825_v24, %v801_v33  ;;  %v852_v27 = vmul.f32 %v849_v32, %v838_v57  ;;  %vm842_vm12 = vcmp.gt.f32.partialorder %v838_v57, 0.0 }
 0x1f1   : > { %v840_v28 = vadd.f32 %v835_v6, %v830_v25 }
 0x1f2   : > { %v839_v40 = vadd.f32 %v835_v6, %v829_v45  ;;  %v856_v37 = vsel %vm842_vm12, %v838_v57, %v852_v27 }
 0x1f3   : > { %v854_v60 = vmul.f32 %v849_v32, %v840_v28  ;;  %865 = vrot.lane.b32.xlu2 %v856_v37, %s1006_s26  ;;  %vm844_vm13 = vcmp.gt.f32.partialorder %v840_v28, 0.0 }
 0x1f4   : > { %v853_v41 = vmul.f32 %v849_v32, %v839_v40  ;;  %vm843_vm14 = vcmp.gt.f32.partialorder %v839_v40, 0.0 }
 0x1f5   : > { %v858_v0 = vsel %vm844_vm13, %v840_v28, %v854_v60 }
 0x1f6   : > { %v857_v42 = vsel %vm843_vm14, %v839_v40, %v853_v41 }
 0x1f7   : > { %867 = vrot.lane.b32.xlu0 %v857_v42, %s1006_s26  ;;  %869 = vrot.lane.b32.xlu1 %v858_v0, %s1006_s26 }
 0x24d   : > { %v866_v38 = vpop.permute.xlu2 %865 }
 0x261   : > { %v864_v47 = vpop.permute.xlu1 %863 }
 0x262   : > { %v871_v39 = vsel %vm815_vm10, %v864_v47, %v866_v38 }
 0x263   : > { %877 = vst [vmem:[%s278_s11] sm:$0xff] %v871_v39 }
 0x269   : > { %v868_v48 = vpop.permute.xlu0 %867  ;;  %v870_v49 = vpop.permute.xlu1 %869 }
 0x26a   : > { %v872_v50 = vsel %vm815_vm10, %v866_v38, %v868_v48  ;;  %v873_v26 = vsel %vm815_vm10, %v868_v48, %v870_v49 }
 0x26b   : > { %878 = vst [vmem:[%s278_s11 + $0x8] sm:$0xff] %v872_v50 }
 0x26c   : > { %879 = vst [vmem:[%s278_s11 + $0x10] sm:$0xff] %v873_v26 }
 0x26d PF: > { %s17_s24 = sadd.s32 1, %s996_s24  }
 0x26e   : > { %p14_p4 = scmp.ge.s32.totalorder %s17_s24, 4  }
 0x270   :  { %16 = sbr.rel (!%p14_p4) target bundleno = 1 (0x1), region = 80 }

</bundles_post_ra>
